<compile_context>
chip_gen: v7x
topology: tpu7x:2x2x1
jax: 0.10.0
libtpu: 0.0.40
codegen_flags: <defaults>
</compile_context>

<pallas_src>
import functools

import jax
import jax.numpy as jnp
from jax.experimental import pallas as pl
from jax.experimental.pallas import tpu as pltpu


def _round_up(x, m):
    return ((x + m - 1) // m) * m


def _cdiv(a, b):
    return -(-a // b)


def _conv_block_kernel(x_ref, w_ref, b_ref, o_ref, p_ref, *, cin, wp, lo):
    """One (batch, row-tile) block: in-VMEM im2col + single MXU dot + bias + ReLU.

    x_ref: (Cin, Li)   bf16  flattened reflect-padded input chunk (row-halo'd)
    w_ref: (Cout, K)   bf16  weights, K = 9*Cin, column order (kh*3+kw)*Cin + ci
    b_ref: (Cout, 1)   f32   bias
    o_ref: (Cout, Lo)  f32   output tile, flattened over (TH, W+2), lane-padded to 128
    p_ref: (K, Lo)     f32   VMEM scratch: the im2col patch tile
    """
    # Build the patch tile: tap (kh, kw) for all Cin is a contiguous lane slice of the
    # flattened chunk at offset kh*(W+2)+kw.  f32 staging keeps the sub-(8,128)-tile
    # sublane stores on the plain masked-vst path; values are exact bf16 either way.
    for kh in range(3):
        for kw in range(3):
            tap = kh * 3 + kw
            off = kh * wp + kw
            p_ref[tap * cin:(tap + 1) * cin, :] = (
                x_ref[:, off:off + lo].astype(jnp.float32))

    patches = p_ref[...].astype(jnp.bfloat16)          # bf16 MXU operands
    acc = jnp.dot(w_ref[...], patches, preferred_element_type=jnp.float32)
    acc = acc + b_ref[...]                              # (Cout, 1) broadcast, f32
    o_ref[...] = jnp.maximum(acc, 0.0).astype(o_ref.dtype)


def _vmem_capacity_bytes():
    try:
        return int(pltpu.get_tpu_info().vmem_capacity_bytes)
    except Exception:
        return 64 * 1024 * 1024          # conservative (v7x per-core) fallback


def _block_vmem_bytes(th, wp, cin, cout, k):
    """Per-grid-step VMEM footprint for a row tile of `th` output rows."""
    lo = _round_up(th * wp, 128)
    li = _round_up(lo + 2 * wp + 2, 128)
    return (2 * cin * li * 2             # double-buffered bf16 input blocks
            + 2 * cout * lo * 4          # double-buffered f32 output blocks
            + k * lo * 4                 # f32 patch scratch (single)
            + cout * k * 2 + cout * 4)   # single-buffered weights + bias


def _pick_rows_per_tile(h, wp, cin, cout, k, n, vmem_cap):
    """Largest row tile whose VMEM footprint fits ~75% of capacity."""
    budget = max(8 << 20, (vmem_cap * 3) // 4)
    th = 1
    for cand in range(1, h + 1):
        if _block_vmem_bytes(cand, wp, cin, cout, k) <= budget:
            th = cand
        else:
            break
    if n == 1:
        # v7x has 2 TensorCores: keep at least 2 parallel grid steps.
        th = min(th, max(1, (h + 1) // 2))
    return max(th, 1)


def _const_spec(shape):
    """Weights / bias never change across the grid -> single-buffer them."""
    index_map = lambda n, s: (0,) * len(shape)
    try:
        return pl.BlockSpec(shape, index_map, pipeline_mode=pl.Buffered(1))
    except TypeError:                     # older jax without pipeline_mode
        return pl.BlockSpec(shape, index_map)


def conv_block_forward(x_nchw, weight_oihw, bias):
    """Pallas implementation of ConvBlock.forward.

    x_nchw:      (N, Cin, H, W)    float32
    weight_oihw: (Cout, Cin, 3, 3) float32  (PyTorch Conv2d layout)
    bias:        (Cout,)           float32
    returns:     (N, Cout, H, W)   float32
    """
    N, Cin, H, W = x_nchw.shape
    Cout = weight_oihw.shape[0]
    Wp = W + 2
    K = 9 * Cin

    vmem_cap = _vmem_capacity_bytes()
    TH = _pick_rows_per_tile(H, Wp, Cin, Cout, K, N, vmem_cap)
    n_sp = _cdiv(H, TH)
    Lo = _round_up(TH * Wp, 128)             # lane-dense output tile (unmasked vst)
    Li = _round_up(Lo + 2 * Wp + 2, 128)     # input tile incl. the largest tap offset

    # Reflection pad once, in bf16 (halves HBM traffic of the dominant operand).
    x_bf = x_nchw.astype(jnp.bfloat16)
    x_pad = jnp.pad(x_bf, ((0, 0), (0, 0), (1, 1), (1, 1)), mode="reflect")
    # Zero rows so the ceil-div last row tile still has a full 2-row halo, then cut
    # halo'd row chunks: chunk s holds padded rows [s*TH, s*TH + TH + 2).
    extra_rows = n_sp * TH - H
    x_pad = jnp.pad(x_pad, ((0, 0), (0, 0), (0, extra_rows), (0, 0)))
    chunks = jnp.stack(
        [x_pad[:, :, s * TH:s * TH + TH + 2, :] for s in range(n_sp)], axis=1)
    chunks = chunks.reshape(N, n_sp, Cin, (TH + 2) * Wp)
    chunks = jnp.pad(chunks, ((0, 0), (0, 0), (0, 0), (0, Li - (TH + 2) * Wp)))

    # (Cout, Cin, kh, kw) -> (Cout, (kh*3+kw)*Cin + ci): matches the patch row order.
    w_mat = jnp.transpose(weight_oihw, (0, 2, 3, 1)).reshape(Cout, K)
    w_mat = w_mat.astype(jnp.bfloat16)
    b_col = bias.reshape(Cout, 1).astype(jnp.float32)

    block_bytes = _block_vmem_bytes(TH, Wp, Cin, Cout, K)
    vmem_limit = max(32 << 20, block_bytes + (8 << 20))
    vmem_limit = int(min(vmem_limit, max(vmem_cap - (4 << 20), 32 << 20)))

    flops = 2 * N * n_sp * Lo * K * Cout
    bytes_accessed = (N * n_sp * Cin * Li * 2 + Cout * K * 2 + Cout * 4
                      + N * n_sp * Cout * Lo * 4)

    kernel = functools.partial(_conv_block_kernel, cin=Cin, wp=Wp, lo=Lo)
    out = pl.pallas_call(
        kernel,
        out_shape=jax.ShapeDtypeStruct((N, n_sp, Cout, Lo), jnp.float32),
        grid_spec=pltpu.PrefetchScalarGridSpec(
            num_scalar_prefetch=0,
            grid=(N, n_sp),
            in_specs=[
                pl.BlockSpec((None, None, Cin, Li), lambda n, s: (n, s, 0, 0)),
                _const_spec((Cout, K)),
                _const_spec((Cout, 1)),
            ],
            out_specs=pl.BlockSpec((None, None, Cout, Lo),
                                   lambda n, s: (n, s, 0, 0)),
            scratch_shapes=[pltpu.VMEM((K, Lo), jnp.float32)],
        ),
        compiler_params=pltpu.CompilerParams(
            dimension_semantics=("parallel", "parallel"),
            vmem_limit_bytes=vmem_limit),
        cost_estimate=pl.CostEstimate(
            flops=flops, transcendentals=0, bytes_accessed=bytes_accessed),
    )(chunks, w_mat, b_col)

    # Drop lane padding, the 2 garbage columns per row and the ceil-div extra rows.
    out = out[:, :, :, :TH * Wp].reshape(N, n_sp, Cout, TH, Wp)
    out = out.transpose(0, 2, 1, 3, 4).reshape(N, Cout, n_sp * TH, Wp)
    return out[:, :, :H, :W]


def _reference_forward(x_nchw, weight_oihw, bias):
    """Pure-JAX reference (reflect pad + conv + relu) for a correctness check."""
    x_pad = jnp.pad(x_nchw, ((0, 0), (0, 0), (1, 1), (1, 1)), mode="reflect")
    out = jax.lax.conv_general_dilated(
        x_pad, weight_oihw, window_strides=(1, 1), padding="VALID",
        dimension_numbers=("NCHW", "OIHW", "NCHW"))
    out = out + bias[None, :, None, None]
    return jnp.maximum(out, 0.0)


if __name__ == "__main__":
    # Small shapes consistent with ConvBlock(dim1=4, dim2=8).
    N, Cin, Cout, H, W = 2, 4, 8, 16, 16

    key = jax.random.PRNGKey(0)
    kx, kw, kb = jax.random.split(key, 3)

    x = jax.random.normal(kx, (N, Cin, H, W), dtype=jnp.float32)
    # Deterministic Conv2d-style init (uniform in +-1/sqrt(fan_in)).
    fan_in = Cin * 3 * 3
    bound = 1.0 / (fan_in ** 0.5)
    weight = jax.random.uniform(kw, (Cout, Cin, 3, 3), jnp.float32,
                                minval=-bound, maxval=bound)
    bias = jax.random.uniform(kb, (Cout,), jnp.float32,
                              minval=-bound, maxval=bound)

    out = jax.jit(conv_block_forward)(x, weight, bias)
    out = jax.block_until_ready(out)

    ref = _reference_forward(x, weight, bias)
    assert out.shape == (N, Cout, H, W)
    # bf16 matmul operands with f32 accumulation: ~1e-3 typical error vs f32 torch.
    assert jnp.allclose(out, ref, atol=2e-2, rtol=2e-2)

    print("KERNEL_OK")
</pallas_src>

<mosaic_0001>
module attributes {stable_mosaic.version = 11 : i64} {
  func.func @_conv_block_kernel(%arg0: i32, %arg1: i32, %arg2: memref<1x1x4x512xbf16, #tpu.memory_space<vmem>>, %arg3: memref<8x36xbf16, #tpu.memory_space<vmem>>, %arg4: memref<8x1xf32, #tpu.memory_space<vmem>>, %arg5: memref<1x1x8x384xf32, #tpu.memory_space<vmem>>, %arg6: memref<36x384xf32, #tpu.memory_space<vmem>>) attributes {dimension_semantics = [#tpu.dimension_semantics<parallel>, #tpu.dimension_semantics<parallel>], iteration_bounds = array<i64: 2, 1>, scalar_prefetch = 0 : i64, scratch_operands = 1 : i64, tpu.core_type = #tpu.core_type<tc>, window_params = [{transform_indices = @transform_0, window_bounds = array<i64: 1, 1, 4, 512>}, {pipeline_mode = #tpu.pipeline_mode<synchronous>, transform_indices = @transform_1, window_bounds = array<i64: 8, 36>}, {pipeline_mode = #tpu.pipeline_mode<synchronous>, transform_indices = @transform_2, window_bounds = array<i64: 8, 1>}, {transform_indices = @transform_3, window_bounds = array<i64: 1, 1, 8, 384>}]} {
    %c0 = arith.constant 0 : index
    %c0_0 = arith.constant 0 : index
    %c0_1 = arith.constant 0 : index
    %c0_2 = arith.constant 0 : index
    %0 = vector.load %arg2[%c0, %c0_0, %c0_1, %c0_2] : memref<1x1x4x512xbf16, #tpu.memory_space<vmem>>, vector<1x1x4x384xbf16>
    %1 = vector.shape_cast %0 : vector<1x1x4x384xbf16> to vector<4x384xbf16>
    %2 = arith.extf %1 : vector<4x384xbf16> to vector<4x384xf32>
    %c0_3 = arith.constant 0 : index
    %c0_4 = arith.constant 0 : index
    %3 = vector.load %arg6[%c0_3, %c0_4] : memref<36x384xf32, #tpu.memory_space<vmem>>, vector<4x384xf32>
    tpu.vector_store %arg6[%c0_3, %c0_4], %2 {strides = array<i32>} : memref<36x384xf32, #tpu.memory_space<vmem>>, vector<4x384xf32>,
    %c0_5 = arith.constant 0 : index
    %c0_6 = arith.constant 0 : index
    %c0_7 = arith.constant 0 : index
    %c1 = arith.constant 1 : index
    %4 = vector.load %arg2[%c0_5, %c0_6, %c0_7, %c1] : memref<1x1x4x512xbf16, #tpu.memory_space<vmem>>, vector<1x1x4x384xbf16>
    %5 = vector.shape_cast %4 : vector<1x1x4x384xbf16> to vector<4x384xbf16>
    %6 = arith.extf %5 : vector<4x384xbf16> to vector<4x384xf32>
    %c4 = arith.constant 4 : index
    %c0_8 = arith.constant 0 : index
    %7 = vector.load %arg6[%c4, %c0_8] : memref<36x384xf32, #tpu.memory_space<vmem>>, vector<4x384xf32>
    tpu.vector_store %arg6[%c4, %c0_8], %6 {strides = array<i32>} : memref<36x384xf32, #tpu.memory_space<vmem>>, vector<4x384xf32>,
    %c0_9 = arith.constant 0 : index
    %c0_10 = arith.constant 0 : index
    %c0_11 = arith.constant 0 : index
    %c2 = arith.constant 2 : index
    %8 = vector.load %arg2[%c0_9, %c0_10, %c0_11, %c2] : memref<1x1x4x512xbf16, #tpu.memory_space<vmem>>, vector<1x1x4x384xbf16>
    %9 = vector.shape_cast %8 : vector<1x1x4x384xbf16> to vector<4x384xbf16>
    %10 = arith.extf %9 : vector<4x384xbf16> to vector<4x384xf32>
    %c8 = arith.constant 8 : index
    %c0_12 = arith.constant 0 : index
    %11 = vector.load %arg6[%c8, %c0_12] : memref<36x384xf32, #tpu.memory_space<vmem>>, vector<4x384xf32>
    tpu.vector_store %arg6[%c8, %c0_12], %10 {strides = array<i32>} : memref<36x384xf32, #tpu.memory_space<vmem>>, vector<4x384xf32>,
    %c0_13 = arith.constant 0 : index
    %c0_14 = arith.constant 0 : index
    %c0_15 = arith.constant 0 : index
    %c18 = arith.constant 18 : index
    %12 = vector.load %arg2[%c0_13, %c0_14, %c0_15, %c18] : memref<1x1x4x512xbf16, #tpu.memory_space<vmem>>, vector<1x1x4x384xbf16>
    %13 = vector.shape_cast %12 : vector<1x1x4x384xbf16> to vector<4x384xbf16>
    %14 = arith.extf %13 : vector<4x384xbf16> to vector<4x384xf32>
    %c12 = arith.constant 12 : index
    %c0_16 = arith.constant 0 : index
    %15 = vector.load %arg6[%c12, %c0_16] : memref<36x384xf32, #tpu.memory_space<vmem>>, vector<4x384xf32>
    tpu.vector_store %arg6[%c12, %c0_16], %14 {strides = array<i32>} : memref<36x384xf32, #tpu.memory_space<vmem>>, vector<4x384xf32>,
    %c0_17 = arith.constant 0 : index
    %c0_18 = arith.constant 0 : index
    %c0_19 = arith.constant 0 : index
    %c19 = arith.constant 19 : index
    %16 = vector.load %arg2[%c0_17, %c0_18, %c0_19, %c19] : memref<1x1x4x512xbf16, #tpu.memory_space<vmem>>, vector<1x1x4x384xbf16>
    %17 = vector.shape_cast %16 : vector<1x1x4x384xbf16> to vector<4x384xbf16>
    %18 = arith.extf %17 : vector<4x384xbf16> to vector<4x384xf32>
    %c16 = arith.constant 16 : index
    %c0_20 = arith.constant 0 : index
    %19 = vector.load %arg6[%c16, %c0_20] : memref<36x384xf32, #tpu.memory_space<vmem>>, vector<4x384xf32>
    tpu.vector_store %arg6[%c16, %c0_20], %18 {strides = array<i32>} : memref<36x384xf32, #tpu.memory_space<vmem>>, vector<4x384xf32>,
    %c0_21 = arith.constant 0 : index
    %c0_22 = arith.constant 0 : index
    %c0_23 = arith.constant 0 : index
    %c20 = arith.constant 20 : index
    %20 = vector.load %arg2[%c0_21, %c0_22, %c0_23, %c20] : memref<1x1x4x512xbf16, #tpu.memory_space<vmem>>, vector<1x1x4x384xbf16>
    %21 = vector.shape_cast %20 : vector<1x1x4x384xbf16> to vector<4x384xbf16>
    %22 = arith.extf %21 : vector<4x384xbf16> to vector<4x384xf32>
    %c20_24 = arith.constant 20 : index
    %c0_25 = arith.constant 0 : index
    %23 = vector.load %arg6[%c20_24, %c0_25] : memref<36x384xf32, #tpu.memory_space<vmem>>, vector<4x384xf32>
    tpu.vector_store %arg6[%c20_24, %c0_25], %22 {strides = array<i32>} : memref<36x384xf32, #tpu.memory_space<vmem>>, vector<4x384xf32>,
    %c0_26 = arith.constant 0 : index
    %c0_27 = arith.constant 0 : index
    %c0_28 = arith.constant 0 : index
    %c36 = arith.constant 36 : index
    %24 = vector.load %arg2[%c0_26, %c0_27, %c0_28, %c36] : memref<1x1x4x512xbf16, #tpu.memory_space<vmem>>, vector<1x1x4x384xbf16>
    %25 = vector.shape_cast %24 : vector<1x1x4x384xbf16> to vector<4x384xbf16>
    %26 = arith.extf %25 : vector<4x384xbf16> to vector<4x384xf32>
    %c24 = arith.constant 24 : index
    %c0_29 = arith.constant 0 : index
    %27 = vector.load %arg6[%c24, %c0_29] : memref<36x384xf32, #tpu.memory_space<vmem>>, vector<4x384xf32>
    tpu.vector_store %arg6[%c24, %c0_29], %26 {strides = array<i32>} : memref<36x384xf32, #tpu.memory_space<vmem>>, vector<4x384xf32>,
    %c0_30 = arith.constant 0 : index
    %c0_31 = arith.constant 0 : index
    %c0_32 = arith.constant 0 : index
    %c37 = arith.constant 37 : index
    %28 = vector.load %arg2[%c0_30, %c0_31, %c0_32, %c37] : memref<1x1x4x512xbf16, #tpu.memory_space<vmem>>, vector<1x1x4x384xbf16>
    %29 = vector.shape_cast %28 : vector<1x1x4x384xbf16> to vector<4x384xbf16>
    %30 = arith.extf %29 : vector<4x384xbf16> to vector<4x384xf32>
    %c28 = arith.constant 28 : index
    %c0_33 = arith.constant 0 : index
    %31 = vector.load %arg6[%c28, %c0_33] : memref<36x384xf32, #tpu.memory_space<vmem>>, vector<4x384xf32>
    tpu.vector_store %arg6[%c28, %c0_33], %30 {strides = array<i32>} : memref<36x384xf32, #tpu.memory_space<vmem>>, vector<4x384xf32>,
    %c0_34 = arith.constant 0 : index
    %c0_35 = arith.constant 0 : index
    %c0_36 = arith.constant 0 : index
    %c38 = arith.constant 38 : index
    %32 = vector.load %arg2[%c0_34, %c0_35, %c0_36, %c38] : memref<1x1x4x512xbf16, #tpu.memory_space<vmem>>, vector<1x1x4x384xbf16>
    %33 = vector.shape_cast %32 : vector<1x1x4x384xbf16> to vector<4x384xbf16>
    %34 = arith.extf %33 : vector<4x384xbf16> to vector<4x384xf32>
    %c32 = arith.constant 32 : index
    %c0_37 = arith.constant 0 : index
    %35 = vector.load %arg6[%c32, %c0_37] : memref<36x384xf32, #tpu.memory_space<vmem>>, vector<4x384xf32>
    tpu.vector_store %arg6[%c32, %c0_37], %34 {strides = array<i32>} : memref<36x384xf32, #tpu.memory_space<vmem>>, vector<4x384xf32>,
    %c0_38 = arith.constant 0 : index
    %c0_39 = arith.constant 0 : index
    %36 = vector.load %arg6[%c0_38, %c0_39] : memref<36x384xf32, #tpu.memory_space<vmem>>, vector<36x384xf32>
    %37 = arith.truncf %36 : vector<36x384xf32> to vector<36x384xbf16>
    %c0_40 = arith.constant 0 : index
    %c0_41 = arith.constant 0 : index
    %38 = vector.load %arg3[%c0_40, %c0_41] : memref<8x36xbf16, #tpu.memory_space<vmem>>, vector<8x36xbf16>
    %cst = arith.constant dense<0.000000e+00> : vector<8x384xf32>
    %39 = tpu.matmul %38, %37, %cst {dimension_numbers = #tpu.dot_dimension_numbers<[1], [0], [0], [1], [0, 0, 1, 1], [], []>} : vector<8x36xbf16>, vector<36x384xbf16>, vector<8x384xf32> -> vector<8x384xf32>
    %c0_42 = arith.constant 0 : index
    %c0_43 = arith.constant 0 : index
    %40 = vector.load %arg4[%c0_42, %c0_43] : memref<8x1xf32, #tpu.memory_space<vmem>>, vector<8x1xf32>
    %41 = vector.broadcast %40 : vector<8x1xf32> to vector<8x384xf32>
    %42 = arith.addf %39, %41 : vector<8x384xf32>
    %cst_44 = arith.constant 0.000000e+00 : f32
    %43 = vector.broadcast %cst_44 : f32 to vector<8x384xf32>
    %44 = arith.maximumf %42, %43 : vector<8x384xf32>
    %c0_45 = arith.constant 0 : index
    %c0_46 = arith.constant 0 : index
    %c0_47 = arith.constant 0 : index
    %c0_48 = arith.constant 0 : index
    %45 = vector.load %arg5[%c0_45, %c0_46, %c0_47, %c0_48] : memref<1x1x8x384xf32, #tpu.memory_space<vmem>>, vector<1x1x8x384xf32>
    %46 = vector.shape_cast %45 : vector<1x1x8x384xf32> to vector<8x384xf32>
    %47 = vector.shape_cast %44 : vector<8x384xf32> to vector<1x1x8x384xf32>
    tpu.vector_store %arg5[%c0_45, %c0_46, %c0_47, %c0_48], %47 {strides = array<i32>} : memref<1x1x8x384xf32, #tpu.memory_space<vmem>>, vector<1x1x8x384xf32>,
    return
  }
  func.func @transform_0(%arg0: i32, %arg1: i32) -> (i32, i32, i32, i32) {
    %c0_i32 = arith.constant 0 : i32
    %c0_i32_0 = arith.constant 0 : i32
    %c0_i32_1 = arith.constant 0 : i32
    return %arg0, %arg1, %c0_i32, %c0_i32_0 : i32, i32, i32, i32
  }
  func.func @transform_1(%arg0: i32, %arg1: i32) -> (i32, i32) {
    %c0_i32 = arith.constant 0 : i32
    %c0_i32_0 = arith.constant 0 : i32
    %c0_i32_1 = arith.constant 0 : i32
    return %c0_i32, %c0_i32_0 : i32, i32
  }
  func.func @transform_2(%arg0: i32, %arg1: i32) -> (i32, i32) {
    %c0_i32 = arith.constant 0 : i32
    %c0_i32_0 = arith.constant 0 : i32
    %c0_i32_1 = arith.constant 0 : i32
    return %c0_i32, %c0_i32_0 : i32, i32
  }
  func.func @transform_3(%arg0: i32, %arg1: i32) -> (i32, i32, i32, i32) {
    %c0_i32 = arith.constant 0 : i32
    %c0_i32_0 = arith.constant 0 : i32
    %c0_i32_1 = arith.constant 0 : i32
    return %arg0, %arg1, %c0_i32, %c0_i32_0 : i32, i32, i32, i32
  }
}

</mosaic_0001>

<bundles_post_ra>
// kernel: conv_block_forward.1
= control target key start
LH: loop header
LB: loop body
LE: loop exit
PB: predicated region body
PF: predicated region fallthrough
CT: control target
= control target key end

     0   :  { %s841_s12 = smov 0   ;;  %s843_s13 = smov 0   ;;  %s909_s0 = inlined_call_operand.vmem [shape: bf16[2,1,4,512], index: 0, kind: input, shape index: {}]   ;;  %s910_s1 = inlined_call_operand.vmem [shape: bf16[8,36], index: 1, kind: input, shape index: {}]   ;;  %s911_s2 = inlined_call_operand.vmem [shape: f32[8,1], index: 2, kind: input, shape index: {}]   ;;  %s912_s3 = inlined_call_operand.vmem [shape: f32[2,1,8,384], index: 3, kind: output, shape index: {}]  }
   0x1   :  { %s845_s14 = smov 0  }
   0x2 LB: > { %s25_s15 = sadd.s32 1, %s804_s13  ;;  %p645_p0 = scmp.ge.s32.totalorder %s808_s14, 1  ;;  %s808_s14 = sphi %s845_s14, %s13_s14   ;;  %s804_s13 = sphi %s843_s13, %s914_s13   ;;  %s800_s12 = sphi %s841_s12, %s913_s12  }
   0x3   : > { %p27_p1 = scmp.ge.s32.totalorder %s25_s15, 2  ;;  %p157_p2 = scmp.lt.s32.totalorder %s808_s14, 3 }
   0x5   : > { %s916_s15 = smov (%p27_p1, %s25_s15), 0  ;;  %p158_p3 = pnand %p645_p0, %p157_p2 }
   0x6   : > { %p189_p4 = scmp.lt.s32.totalorder (!%p158_p3), %s800_s12, 1  ;;  %s810_s20 = smov (!%p158_p3), 110   ;;  %v813_v15 = vmov (!%p158_p3), 0.0   ;;  %v819_v18 = vmov (!%p158_p3), 0   ;;  %vm820_vm0 = vmmov (!%p158_p3), 0   ;;  %v442_v19 = vld [vmem:[%s911_s2] sm:$0xff] (!%p158_p3) }
   0x7   : > { %161 = sbr.rel (%p158_p3) target bundleno = 402 (0x192), region = 32  ;;  %s811_s21 = smov (!%p158_p3), 127   ;;  %659 = vmatprep.subr.bf16.mxu1 (!%p158_p3), %v813_v15  ;;  %494 = vmatprep.mubr.bf16.mxu0 (!%p158_p3), %v819_v18  ;;  %vm282_vm1 = vcmask (!%p158_p3), 900096   ;;  %vm232_vm2 = vcmask (!%p158_p3), 1039360   ;;  %vm257_vm3 = vcmask (!%p158_p3), 1031168   ;;  %vm307_vm4 = vcmask (!%p158_p3), 891904  }
   0x8   : > { %s812_s22 = smov (!%p158_p3), 126   ;;  %s814_s23 = smov (!%p158_p3), 109   ;;  %665 = vmatprep.mubr.msk.bf16.mxu1 (!%p158_p3), %vm820_vm0, %v813_v15  ;;  %785 = vset.pattern.permute.xlu0 (!%p158_p3), %v819_v18  ;;  %vm332_vm5 = vcmask (!%p158_p3), 883712   ;;  %vm357_vm6 = vcmask (!%p158_p3), 752640   ;;  %vm382_vm7 = vcmask (!%p158_p3), 744448   ;;  %vm407_vm8 = vcmask (!%p158_p3), 736256  }
   0x9   : > { %s815_s24 = smov (!%p158_p3), 108   ;;  %s816_s25 = smov (!%p158_p3), 92   ;;  %vm452_vm9 = vcmask (!%p158_p3), 1041408   ;;  %vm448_vm10 = vcmask (!%p158_p3), 293888  }
   0xa   : > { %s817_s26 = smov (!%p158_p3), 91   ;;  %s818_s27 = smov (!%p158_p3), 90  }
   0xe   : > { %s918_s12 = smov (!%p189_p4, %s800_s12), 1 }
   0xf   : > { %s654_s16 = sshll.u32 %s918_s12, 3  ;;  %s669_s5 = smul.u32 24, %s918_s12 }
  0x10   : > { %s197_s19 = scalar_lea.vmem %s909_s0, %s654_s16 }
  0x11   : > { %v267_v0 = vld [vmem:[%s197_s19] sm:$0xff]  ;;  %s206_s8 = scalar_lea.vmem %s912_s3, %s669_s5 }
  0x12   : > { %v208_v1 = vld [vmem:[%s197_s19] sm:$0x3f]  ;;  %v268_v2 = vunpack.c.l.bf16 %v267_v0  ;;  %v269_v3 = vunpack.c.h.bf16 %v267_v0 }
  0x13   : > { %v209_v4 = vunpack.c.l.bf16 %v208_v1  ;;  %v210_v5 = vunpack.c.h.bf16 %v208_v1 }
  0x14   : > { %v273_v6 = vcombine.low %v269_v3, %v269_v3  ;;  %v272_v7 = vcombine.low %v268_v2, %v268_v2  ;;  %v247_v8 = vcombine.high %v268_v2, %v268_v2  ;;  %v248_v12 = vcombine.high %v269_v3, %v269_v3 }
  0x15   : > { %214 = vst [vmem:[#allocation2] sm:$0xf] %v209_v4  ;;  %216 = vst [vmem:[#allocation2 + $0x10] sm:$0xf] %v210_v5  ;;  %v212_v13 = vcombine.high %v209_v4, %v209_v4 }
  0x16   : > { %v715_v9 = vpack.i.bf16 %v273_v6, %v268_v2  ;;  %v710_v10 = vpack.i.bf16 %v269_v3, %v247_v8  ;;  %v720_v11 = vpack.i.bf16 %v269_v3, %v272_v7  ;;  %v725_v14 = vpack.i.bf16 %v248_v12, %v268_v2 }
  0x17   : > { %215 = vst [vmem:[#allocation2 + $0x8] sm:$0xf] %v212_v13  ;;  %v775_v16 = vpack.i.bf16 %v247_v8, %v268_v2  ;;  %v780_v17 = vpack.i.bf16 %v248_v12, %v269_v3 }
  0x18   : > { %716 = vrot.lane.b32.xlu1 %v715_v9, %s810_s20  ;;  %706 = vrot.lane.b32.xlu0 %v715_v9, %s811_s21 }
  0x1c   : > { %711 = vrot.lane.b32.xlu0 %v710_v10, %s812_s22  ;;  %721 = vrot.lane.b32.xlu1 %v720_v11, %s811_s21 }
  0x20   : > { %726 = vrot.lane.b32.xlu0 %v725_v14, %s812_s22  ;;  %731 = vrot.lane.b32.xlu1 %v720_v11, %s810_s20 }
  0x24   : > { %736 = vrot.lane.b32.xlu0 %v710_v10, %s814_s23  ;;  %741 = vrot.lane.b32.xlu1 %v715_v9, %s815_s24 }
  0x28   : > { %746 = vrot.lane.b32.xlu0 %v710_v10, %s816_s25  ;;  %751 = vrot.lane.b32.xlu1 %v715_v9, %s817_s26 }
  0x2c   : > { %756 = vrot.lane.b32.xlu0 %v725_v14, %s814_s23  ;;  %761 = vrot.lane.b32.xlu1 %v720_v11, %s815_s24 }
  0x30   : > { %766 = vrot.lane.b32.xlu0 %v725_v14, %s816_s25  ;;  %771 = vrot.lane.b32.xlu1 %v720_v11, %s817_s26 }
  0x34   : > { %776 = vrot.lane.b32.xlu0 %v775_v16, %s818_s27  ;;  %781 = vrot.lane.b32.xlu1 %v780_v17, %s818_s27 }
  0x38   : > { %445 = vperm.xlu0 %785, %v442_v19  }
  0x8a   : > { %v717_v20 = vpop.permute.xlu1 %716  ;;  %v707_v21 = vpop.permute.xlu0 %706 }
  0x8b   : > { %v719_v22 = vunpack.i.h.bf16 %v717_v20  ;;  %v718_v23 = vunpack.i.l.bf16 %v717_v20  ;;  %v709_v24 = vunpack.i.h.bf16 %v707_v21  ;;  %v708_v25 = vunpack.i.l.bf16 %v707_v21 }
  0x8d   : > { %v284_v26 = vsel %vm282_vm1, %v718_v23, %v719_v22  ;;  %v234_v27 = vsel %vm232_vm2, %v708_v25, %v709_v24 }
  0x8e   : > { %290 = vst [vmem:[#allocation2 + $0x20] sm:$0xf0] %v284_v26  ;;  %240 = vst [vmem:[#allocation2 + $0x8] sm:$0xf0] %v234_v27  ;;  %v712_v28 = vpop.permute.xlu0 %711  ;;  %v722_v29 = vpop.permute.xlu1 %721 }
  0x8f   : > { %v714_v30 = vunpack.i.h.bf16 %v712_v28  ;;  %v713_v31 = vunpack.i.l.bf16 %v712_v28  ;;  %v724_v32 = vunpack.i.h.bf16 %v722_v29  ;;  %v723_v33 = vunpack.i.l.bf16 %v722_v29 }
  0x91   : > { %v259_v34 = vsel %vm257_vm3, %v713_v31, %v714_v30  ;;  %v235_v35 = vsel %vm232_vm2, %v709_v24, %v724_v32  ;;  %v233_v36 = vsel %vm232_vm2, %v723_v33, %v708_v25 }
  0x92   : > { %265 = vst [vmem:[#allocation2 + $0x20] sm:$0xf] %v259_v34  ;;  %241 = vst [vmem:[#allocation2 + $0x10] sm:$0xf0] %v235_v35  ;;  %v727_v37 = vpop.permute.xlu0 %726  ;;  %v732_v38 = vpop.permute.xlu1 %731 }
  0x93   : > { %239 = vst [vmem:[#allocation2] sm:$0xf0] %v233_v36  ;;  %v729_v39 = vunpack.i.h.bf16 %v727_v37  ;;  %v728_v40 = vunpack.i.l.bf16 %v727_v37  ;;  %v734_v41 = vunpack.i.h.bf16 %v732_v38  ;;  %v733_v42 = vunpack.i.l.bf16 %v732_v38 }
  0x95   : > { %v258_v43 = vsel %vm257_vm3, %v728_v40, %v713_v31  ;;  %v260_v44 = vsel %vm257_vm3, %v714_v30, %v729_v39  ;;  %v285_v45 = vsel %vm282_vm1, %v719_v22, %v734_v41  ;;  %v283_v46 = vsel %vm282_vm1, %v733_v42, %v718_v23  ;;  %v418_v55 = vld [vmem:[#allocation2 + $0x8] sm:$0xff] }
  0x96   : > { %264 = vst [vmem:[#allocation2 + $0x18] sm:$0xf] %v258_v43  ;;  %266 = vst [vmem:[#allocation2 + $0x28] sm:$0xf] %v260_v44  ;;  %v737_v47 = vpop.permute.xlu0 %736  ;;  %v742_v48 = vpop.permute.xlu1 %741 }
  0x97   : > { %291 = vst [vmem:[#allocation2 + $0x28] sm:$0xf0] %v285_v45  ;;  %289 = vst [vmem:[#allocation2 + $0x18] sm:$0xf0] %v283_v46  ;;  %v739_v49 = vunpack.i.h.bf16 %v737_v47  ;;  %v738_v50 = vunpack.i.l.bf16 %v737_v47  ;;  %v744_v51 = vunpack.i.h.bf16 %v742_v48  ;;  %v743_v52 = vunpack.i.l.bf16 %v742_v48 }
  0x99   : > { %v309_v53 = vsel %vm307_vm4, %v738_v50, %v739_v49  ;;  %v334_v54 = vsel %vm332_vm5, %v743_v52, %v744_v51  ;;  %v421_v56 = vld [vmem:[#allocation2 + $0x20] sm:$0xff]  ;;  %v419_v4 = vld [vmem:[#allocation2 + $0x10] sm:$0xff] }
  0x9a   : > { %315 = vst [vmem:[#allocation2 + $0x38] sm:$0xf] %v309_v53  ;;  %340 = vst [vmem:[#allocation2 + $0x38] sm:$0xf0] %v334_v54  ;;  %v747_v57 = vpop.permute.xlu0 %746  ;;  %v752_v58 = vpop.permute.xlu1 %751  ;;  %v433_v59 = vpack.c.bf16 %v421_v56, %v418_v55  ;;  %v417_v0 = vld [vmem:[#allocation2] sm:$0xff] }
  0x9b   : > { %v749_v60 = vunpack.i.h.bf16 %v747_v57  ;;  %v748_v61 = vunpack.i.l.bf16 %v747_v57  ;;  %v754_v62 = vunpack.i.h.bf16 %v752_v58  ;;  %v753_v63 = vunpack.i.l.bf16 %v752_v58  ;;  %v441_v55 = vld [vmem:[%s910_s1] sm:$0xf] }
  0x9c   : > { %462 = vmatprep.subr.bf16.mxu0 %v433_v59 }
  0x9d   : > { %v359_v1 = vsel %vm357_vm6, %v748_v61, %v749_v60  ;;  %v384_v2 = vsel %vm382_vm7, %v753_v63, %v754_v62 }
  0x9e   : > { %v420_v3 = vld [vmem:[#allocation2 + $0x18] sm:$0xff]  ;;  %v422_v5 = vld [vmem:[#allocation2 + $0x28] sm:$0xff]  ;;  %365 = vst [vmem:[#allocation2 + $0x50] sm:$0xf] %v359_v1  ;;  %390 = vst [vmem:[#allocation2 + $0x50] sm:$0xf0] %v384_v2  ;;  %v757_v6 = vpop.permute.xlu0 %756  ;;  %v762_v7 = vpop.permute.xlu1 %761 }
  0x9f   : > { %v432_v8 = vpack.c.bf16 %v420_v3, %v417_v0  ;;  %v434_v9 = vpack.c.bf16 %v422_v5, %v419_v4  ;;  %v759_v10 = vunpack.i.h.bf16 %v757_v6  ;;  %v758_v11 = vunpack.i.l.bf16 %v757_v6 }
  0xa0   : > { %v764_v12 = vunpack.i.h.bf16 %v762_v7  ;;  %v763_v13 = vunpack.i.l.bf16 %v762_v7 }
  0xa1   : > { %463 = vmatpush1.bf16.msra.mxu0 %v432_v8  ;;  %660 = vmatpush3.bf16.msra.mxu1 %v434_v9  ;;  %v308_v14 = vsel %vm307_vm4, %v758_v11, %v738_v50  ;;  %v310_v16 = vsel %vm307_vm4, %v739_v49, %v759_v10  ;;  %v424_v29 = vld [vmem:[#allocation2 + $0x38] sm:$0xff] }
  0xa2   : > { %v333_v17 = vsel %vm332_vm5, %v763_v13, %v743_v52  ;;  %v335_v18 = vsel %vm332_vm5, %v744_v51, %v764_v12  ;;  %661 = vmatprep.subr.bf16.mxu1 %v813_v15  ;;  %314 = vst [vmem:[#allocation2 + $0x30] sm:$0xf] %v308_v14  ;;  %316 = vst [vmem:[#allocation2 + $0x40] sm:$0xf] %v310_v16  ;;  %v767_v19 = vpop.permute.xlu0 %766  ;;  %v772_v20 = vpop.permute.xlu1 %771 }
  0xa3   : > { %339 = vst [vmem:[#allocation2 + $0x30] sm:$0xf0] %v333_v17  ;;  %341 = vst [vmem:[#allocation2 + $0x40] sm:$0xf0] %v335_v18  ;;  %v769_v21 = vunpack.i.h.bf16 %v767_v19  ;;  %v768_v22 = vunpack.i.l.bf16 %v767_v19  ;;  %v774_v23 = vunpack.i.h.bf16 %v772_v20  ;;  %v773_v24 = vunpack.i.l.bf16 %v772_v20 }
  0xa5   : > { %v358_v25 = vsel %vm357_vm6, %v768_v22, %v748_v61  ;;  %v360_v26 = vsel %vm357_vm6, %v749_v60, %v769_v21  ;;  %v383_v27 = vsel %vm382_vm7, %v773_v24, %v753_v63  ;;  %v385_v28 = vsel %vm382_vm7, %v754_v62, %v774_v23  ;;  %v427_v30 = vld [vmem:[#allocation2 + $0x50] sm:$0xff] }
  0xa6   : > { %364 = vst [vmem:[#allocation2 + $0x48] sm:$0xf] %v358_v25  ;;  %366 = vst [vmem:[#allocation2 + $0x58] sm:$0xf] %v360_v26  ;;  %v777_v31 = vpop.permute.xlu0 %776  ;;  %v782_v32 = vpop.permute.xlu1 %781  ;;  %v436_v33 = vpack.c.bf16 %v427_v30, %v424_v29 }
  0xa7   : > { %389 = vst [vmem:[#allocation2 + $0x48] sm:$0xf0] %v383_v27  ;;  %391 = vst [vmem:[#allocation2 + $0x58] sm:$0xf0] %v385_v28  ;;  %v779_v34 = vunpack.i.h.bf16 %v777_v31  ;;  %v778_v35 = vunpack.i.l.bf16 %v777_v31  ;;  %v784_v36 = vunpack.i.h.bf16 %v782_v32  ;;  %v783_v37 = vunpack.i.l.bf16 %v782_v32 }
  0xa8   : > { %464 = vmatprep.subr.bf16.mxu0 %v436_v33 }
  0xa9   : > { %v408_v38 = vsel %vm407_vm8, %v778_v35, %v779_v34  ;;  %v409_v39 = vsel %vm407_vm8, %v779_v34, %v783_v37  ;;  %v410_v40 = vsel %vm407_vm8, %v783_v37, %v784_v36 }
  0xaa   : > { %414 = vst [vmem:[#allocation2 + $0x60] sm:$0xf] %v408_v38  ;;  %415 = vst [vmem:[#allocation2 + $0x68] sm:$0xf] %v409_v39  ;;  %v423_v41 = vld [vmem:[#allocation2 + $0x30] sm:$0xff]  ;;  %v425_v43 = vld [vmem:[#allocation2 + $0x40] sm:$0xff] }
  0xab   : > { %416 = vst [vmem:[#allocation2 + $0x70] sm:$0xf] %v410_v40 }
  0xae   : > { %v426_v42 = vld [vmem:[#allocation2 + $0x48] sm:$0xff]  ;;  %v428_v44 = vld [vmem:[#allocation2 + $0x58] sm:$0xff] }
  0xaf   : > { %v435_v45 = vpack.c.bf16 %v426_v42, %v423_v41  ;;  %v437_v46 = vpack.c.bf16 %v428_v44, %v425_v43 }
  0xb1   : > { %465 = vmatpush1.bf16.msra.mxu0 %v435_v45  ;;  %662 = vmatpush3.bf16.msra.mxu1 %v437_v46  ;;  %v430_v47 = vld [vmem:[#allocation2 + $0x68] sm:$0xf]  ;;  %v429_v48 = vld [vmem:[#allocation2 + $0x60] sm:$0xf] }
  0xb2   : > { %663 = vmatprep.subr.bf16.mxu1 %v813_v15  ;;  %v431_v49 = vld [vmem:[#allocation2 + $0x70] sm:$0xf]  ;;  %v439_v50 = vpack.c.bf16 %v430_v47, %v430_v47  ;;  %v438_v51 = vpack.c.bf16 %v429_v48, %v429_v48 }
  0xb3   : > { %v440_v52 = vpack.c.bf16 %v431_v49, %v431_v49 }
  0xb4   : > { %649 = vmatprep.subr.msk.bf16.mxu0 %vm452_vm9, %v439_v50  ;;  %v454_v53 = vsel %vm452_vm9, %v438_v51, 0 }
  0xb5   : > { %v460_v54 = vsel %vm452_vm9, %v440_v52, 0  ;;  %467 = vmatpush1.bf16.msra.mxu0 %v454_v53 }
  0xb6   : > { %664 = vmatpush3.bf16.msra.mxu1 %v460_v54 }
  0xb7   : > { %v446_v56 = vpop.permute.xlu0 %445 }
  0xb8   : > { %650 = vmatmul.mubr.msk.bf16.vlgmr.msra.gmra.mrb[0].mxu0 %vm448_vm10, %v441_v55 }
  0xb9   : > { %666 = vmatmul.mubr.msk.bf16.vlgmr.msra.gmra.mrb[0].mxu1 %vm448_vm10, %v441_v55 }
 0x18b   : > { %v496_v15 = vpop.f32.mrb[0].mxu0 }
 0x18c   : > { %v537_v57 = vpop.f32.mrb[0].mxu1  ;;  %v497_v58 = vadd.f32 %v496_v15, %v446_v56  ;;  %v498_v60 = vpop.f32.mrb[1].mxu0 }
 0x18d   : > { %v538_v59 = vadd.f32 %v537_v57, %v446_v56  ;;  %v667_v61 = vpop.f32.mrb[1].mxu1  ;;  %v499_v62 = vadd.f32 %v498_v60, %v446_v56  ;;  %v500_v63 = vpop.f32.mrb[2].mxu0 }
 0x18e   : > { %v540_v0 = vpop.f32.mrb[2].mxu1  ;;  %v543_v1 = vmax.f32 %v497_v58, 0.0  ;;  %v501_v3 = vpop.f32.mrb[3].mxu0 }
 0x18f   : > { %v545_v2 = vmax.f32 %v538_v59, 0.0  ;;  %v668_v4 = vpop.f32.mrb[3].mxu1  ;;  %v544_v5 = vmax.f32 %v499_v62, 0.0 }
 0x190   : > { %546 = vst [vmem:[%s206_s8] sm:$0xff] %v543_v1 }
 0x191   : > { %548 = vst [vmem:[%s206_s8 + $0x10] sm:$0xff] %v545_v2  ;;  %547 = vst [vmem:[%s206_s8 + $0x8] sm:$0xff] %v544_v5 }
 0x192 PF: > { %s13_s14 = sadd.s32 1, %s808_s14   ;;  %s913_s12 = smov %s804_s13 }
 0x193   : > { %p10_p5 = scmp.ge.s32.totalorder %s13_s14, 4   ;;  %s914_s13 = smov %s916_s15 }
 0x195   :  { %12 = sbr.rel (!%p10_p5) target bundleno = 2 (0x2), region = 62 }

</bundles_post_ra>
